<compile_context>
chip_gen: v6e
topology: v6e:2x2x1
jax: 0.10.0
libtpu: 0.0.40
codegen_flags: <defaults>
</compile_context>

<pallas_src>
import functools
import math

import jax
import jax.numpy as jnp
from jax import lax
from jax.experimental import pallas as pl
from jax.experimental.pallas import tpu as pltpu


def _sinusoidal_pe_kernel(x_ref, o_ref, *, seq_tile, merge_mode, log_base):
    """x_ref / o_ref: (1, seq_tile, D) VMEM tiles."""
    d = x_ref.shape[-1]
    s0 = pl.program_id(1) * seq_tile  # absolute seq offset of this tile

    # Positions (sublane axis) and lane index (feature axis), 2-D iotas.
    pos = (lax.broadcasted_iota(jnp.int32, (seq_tile, d), 0) + s0).astype(
        jnp.float32
    )
    lane = lax.broadcasted_iota(jnp.int32, (seq_tile, d), 1)

    # freq index i = lane // 2 ; even lanes -> sin, odd lanes -> cos.
    freq_idx = lax.shift_right_logical(lane, 1).astype(jnp.float32)
    is_sin = lax.bitwise_and(lane, 1) == 0

    # 10000^(-2 i / D) = exp(-2 i ln(10000) / D)   (EUP)
    inv_freq = jnp.exp(freq_idx * (-2.0 * log_base / float(d)))
    theta = pos * inv_freq
    pe = jnp.where(is_sin, jnp.sin(theta), jnp.cos(theta))

    x = x_ref[0].astype(jnp.float32)
    if merge_mode == "add":
        out = x + pe
    elif merge_mode == "mul":
        out = x * pe
    else:  # pragma: no cover
        raise ValueError(f"unsupported merge_mode: {merge_mode}")
    o_ref[0] = out.astype(o_ref.dtype)


def _choose_seq_tile(seq_len, d, target_bytes=4 << 20):
    """Largest seq tile ~target_bytes (f32), multiple of 8, capped at seq_len."""
    if seq_len * d * 4 <= target_bytes:
        return seq_len
    ts = max(8, target_bytes // (d * 4))
    ts = (ts // 8) * 8
    return int(min(ts, seq_len))


def sinusoidal_positional_embedding(x, merge_mode="add"):
    """out = merge(x, sinusoidal_pe)  with x: [B, S, D], D even."""
    b, s, d = x.shape
    assert d % 2 == 0, "output_dim must be even"
    ts = _choose_seq_tile(s, d)

    kernel = functools.partial(
        _sinusoidal_pe_kernel,
        seq_tile=ts,
        merge_mode=merge_mode,
        log_base=math.log(10000.0),
    )

    return pl.pallas_call(
        kernel,
        out_shape=jax.ShapeDtypeStruct((b, s, d), x.dtype),
        grid_spec=pltpu.PrefetchScalarGridSpec(
            num_scalar_prefetch=0,
            grid=(b, pl.cdiv(s, ts)),
            in_specs=[pl.BlockSpec((1, ts, d), lambda bi, si: (bi, si, 0))],
            out_specs=pl.BlockSpec((1, ts, d), lambda bi, si: (bi, si, 0)),
        ),
        compiler_params=pltpu.CompilerParams(
            # Fully independent tiles -> both axes parallel (2 TCs on v7x).
            dimension_semantics=("parallel", "parallel"),
            vmem_limit_bytes=64 << 20,
        ),
    )(x)


def _reference(x, merge_mode="add"):
    """Pure-JAX port of the PyTorch forward (f32)."""
    _, s, d = x.shape
    position_ids = jnp.arange(s, dtype=jnp.float32)[None]            # [1, S]
    idx = jnp.arange(d // 2, dtype=jnp.float32)
    inv_freq = jnp.power(10000.0, -2.0 * idx / d)                     # [D/2]
    pe = jnp.einsum("bn,d->bnd", position_ids, inv_freq)              # [1,S,D/2]
    pe = jnp.stack([jnp.sin(pe), jnp.cos(pe)], axis=-1).reshape(1, s, d)
    if merge_mode == "add":
        return x + pe
    return x * pe


if __name__ == "__main__":
    # Small shapes consistent with the module: batch=2, seq=8, hidden=32.
    B, S, D = 2, 8, 32
    key = jax.random.PRNGKey(0)
    x = jax.random.normal(key, (B, S, D), jnp.float32)

    out_add = jax.block_until_ready(sinusoidal_positional_embedding(x, "add"))
    out_mul = jax.block_until_ready(sinusoidal_positional_embedding(x, "mul"))

    ref_add = _reference(x, "add")
    ref_mul = _reference(x, "mul")

    assert out_add.shape == (B, S, D)
    assert out_mul.shape == (B, S, D)
    assert jnp.allclose(out_add, ref_add, atol=1e-4, rtol=1e-4), "add mismatch"
    assert jnp.allclose(out_mul, ref_mul, atol=1e-4, rtol=1e-4), "mul mismatch"

    print("KERNEL_OK")
</pallas_src>

<mosaic_0001>
module attributes {stable_mosaic.version = 11 : i64} {
  func.func @_sinusoidal_pe_kernel(%arg0: i32, %arg1: i32, %arg2: memref<1x8x32xf32, #tpu.memory_space<vmem>>, %arg3: memref<1x8x32xf32, #tpu.memory_space<vmem>>) attributes {dimension_semantics = [#tpu.dimension_semantics<parallel>, #tpu.dimension_semantics<parallel>], iteration_bounds = array<i64: 2, 1>, scalar_prefetch = 0 : i64, scratch_operands = 0 : i64, tpu.core_type = #tpu.core_type<tc>, window_params = [{transform_indices = @transform_0, window_bounds = array<i64: 1, 8, 32>}, {transform_indices = @transform_1, window_bounds = array<i64: 1, 8, 32>}]} {
    %c8_i32 = arith.constant 8 : i32
    %0 = arith.muli %arg1, %c8_i32 : i32
    %1 = tpu.iota {dimensions = array<i32: 0>} : vector<8x32xi32>
    %2 = vector.broadcast %0 : i32 to vector<8x32xi32>
    %3 = arith.addi %1, %2 : vector<8x32xi32>
    %4 = arith.sitofp %3 : vector<8x32xi32> to vector<8x32xf32>
    %5 = tpu.iota {dimensions = array<i32: 1>} : vector<8x32xi32>
    %c1_i32 = arith.constant 1 : i32
    %6 = vector.broadcast %c1_i32 : i32 to vector<8x32xi32>
    %7 = arith.shrui %5, %6 : vector<8x32xi32>
    %8 = arith.sitofp %7 : vector<8x32xi32> to vector<8x32xf32>
    %c1_i32_0 = arith.constant 1 : i32
    %9 = vector.broadcast %c1_i32_0 : i32 to vector<8x32xi32>
    %10 = arith.andi %5, %9 : vector<8x32xi32>
    %c0_i32 = arith.constant 0 : i32
    %11 = vector.broadcast %c0_i32 : i32 to vector<8x32xi32>
    %12 = arith.cmpi eq, %10, %11 : vector<8x32xi32>
    %cst = arith.constant -0.575646281 : f32
    %13 = vector.broadcast %cst : f32 to vector<8x32xf32>
    %14 = arith.mulf %8, %13 : vector<8x32xf32>
    %15 = math.exp %14 : vector<8x32xf32>
    %16 = arith.mulf %4, %15 : vector<8x32xf32>
    %17 = math.sin %16 : vector<8x32xf32>
    %18 = math.cos %16 : vector<8x32xf32>
    %19 = arith.select %12, %17, %18 : vector<8x32xi1>, vector<8x32xf32>
    %c0 = arith.constant 0 : index
    %c0_1 = arith.constant 0 : index
    %c0_2 = arith.constant 0 : index
    %20 = vector.load %arg2[%c0, %c0_1, %c0_2] : memref<1x8x32xf32, #tpu.memory_space<vmem>>, vector<1x8x32xf32>
    %21 = vector.shape_cast %20 : vector<1x8x32xf32> to vector<8x32xf32>
    %22 = arith.addf %21, %19 : vector<8x32xf32>
    %c0_3 = arith.constant 0 : index
    %c0_4 = arith.constant 0 : index
    %c0_5 = arith.constant 0 : index
    %23 = vector.load %arg3[%c0_3, %c0_4, %c0_5] : memref<1x8x32xf32, #tpu.memory_space<vmem>>, vector<1x8x32xf32>
    %24 = vector.shape_cast %23 : vector<1x8x32xf32> to vector<8x32xf32>
    %25 = vector.shape_cast %22 : vector<8x32xf32> to vector<1x8x32xf32>
    tpu.vector_store %arg3[%c0_3, %c0_4, %c0_5], %25 {strides = array<i32>} : memref<1x8x32xf32, #tpu.memory_space<vmem>>, vector<1x8x32xf32>,
    return
  }
  func.func @transform_0(%arg0: i32, %arg1: i32) -> (i32, i32, i32) {
    %c0_i32 = arith.constant 0 : i32
    %c0_i32_0 = arith.constant 0 : i32
    return %arg0, %arg1, %c0_i32 : i32, i32, i32
  }
  func.func @transform_1(%arg0: i32, %arg1: i32) -> (i32, i32, i32) {
    %c0_i32 = arith.constant 0 : i32
    %c0_i32_0 = arith.constant 0 : i32
    return %arg0, %arg1, %c0_i32 : i32, i32, i32
  }
}

</mosaic_0001>

<bundles_post_ra>
// kernel: tpu_custom_call.1
= control target key start
LH: loop header
LB: loop body
LE: loop exit
PB: predicated region body
PF: predicated region fallthrough
CT: control target
= control target key end

     0   :  { %6 = vsyncpa [#allocation3], 0  ;;  %s871_s0 = inlined_call_operand.hbm [shape: f32[2,8,32], index: 0, kind: input, shape index: {}]   ;;  %s872_s1 = inlined_call_operand.hbm [shape: f32[2,8,32], index: 1, kind: output, shape index: {}]  }
   0x1   :  { %8 = vsyncpa [#allocation3 + $0x1], 0 }
   0x2   :  { %9 = vsyncpa [#allocation4], 0 }
   0x3   :  { %11 = vsyncpa [#allocation4 + $0x1], 0  ;;  %s699_s6 = smov 0   ;;  %s701_s7 = smov 0  }
   0x4   :  { %s703_s8 = smov 0   ;;  %s705_s9 = smov 0  }
   0x5   :  { %s707_s10 = smov 0   ;;  %s709_s11 = smov 0  }
   0x6 LB: > { %s472_s12 = sadd.s32 4294967295, %s679_s11   ;;  %s473_s13 = sadd.s32 4294967294, %s679_s11   ;;  %s679_s11 = sphi %s709_s11, %s17_s11   ;;  %s675_s10 = sphi %s707_s10, %s884_s10   ;;  %s671_s9 = sphi %s705_s9, %s883_s9   ;;  %s667_s8 = sphi %s703_s8, %s882_s8   ;;  %s663_s7 = sphi %s701_s7, %s881_s7   ;;  %s659_s6 = sphi %s699_s6, %s880_s6  }
   0x7   : > { %s29_s14 = sadd.s32 1, %s675_s10  ;;  %s38_s15 = sadd.s32 1, %s667_s8 }
   0x8   : > { %p31_p0 = scmp.ge.s32.totalorder %s29_s14, 2  ;;  %p45_p1 = scmp.ne.s32.totalorder %s667_s8, %s663_s7 }
   0x9   : > { %p46_p2 = scmp.eq.s32.totalorder %s679_s11, 0  ;;  %p51_p3 = scmp.ne.s32.totalorder %s663_s7, %s659_s6 }
   0xa   : > { %s886_s14 = smov (%p31_p0, %s29_s14), 0  ;;  %p52_p5 = scmp.eq.s32.totalorder %s472_s12, 0 }
   0xb   : > { %p740_p4 = por %p46_p2, %p45_p1  ;;  %s33_s17 = ssub.s32 %s675_s10, %s886_s14 }
   0xc   : > { %p77_p6 = scmp.eq.s32.totalorder %s472_s12, 1  ;;  %p36_p7 = scmp.eq.s32.totalorder %s33_s17, 0 }
   0xd   : > { %p746_p8 = por %p52_p5, %p51_p3  ;;  %p83_p10 = scmp.eq.s32.totalorder %s473_s13, 1 }
   0xe   : > { %p750_p9 = por %p77_p6, %p45_p1  ;;  %p509_p13 = scmp.lt.s32.totalorder %s679_s11, 2 }
   0xf   : > { %s755_s20 = scalar_select %p36_p7, %s667_s8, %s38_s15  }
  0x10   : > { %p757_p11 = por %p83_p10, %p51_p3  ;;  %s103_s22 = sand.u32 1, %s667_s8  }
  0x11   : > { %s476_s23 = sshll.u32 %s103_s22, 3  ;;  %s477_s24 = sshll.u32 %s675_s10, 7 }
  0x12   : > { %s876_s21 = scalar_select %p757_p11, 1, 0 }
  0x13   : > { %s113_s27 = scalar_lea.hbm %s871_s0, %s477_s24  ;;  %s107_s28 = scalar_lea.vmem [#allocation2], %s476_s23 }
  0x14   : > { %s115_s29 = sshll.u32 %s107_s28, 4  ;;  %p770_p0 = pnand %p509_p13, %p740_p4  ;;  %s116_s29 = int_to_ptr.vmem [resolvable:$true] %s115_s29 }
  0x15   : > { %p478_p1 = scmp.ge.s32.totalorder %s679_s11, 1  ;;  %p120_p2 = scmp.lt.s32.totalorder %s679_s11, 3 }
  0x16   : > { %s104_s2 = scalar_lea.sflag [#allocation3], %s103_s22  ;;  %p573_p3 = pneg %p770_p0 }
  0x17   : > { %s584_s3 = scalar_lea.vmem %s116_s29, 128  ;;  %s681_s4 = smov [#allocation2]  }
  0x18   : > { %p585_p5 = scmp.ne.s32.totalorder %s116_s29, %s584_s3  ;;  %s589_s5 = sshll.u32 %s681_s4, 4  ;;  %s590_s5 = int_to_ptr.vmem [resolvable:$false] %s589_s5 }
  0x19   : > { %s591_s12 = scalar_lea.vmem %s590_s5, 256  ;;  %p592_p10 = scmp.lt.s32.totalorder %s116_s29, %s590_s5 }
  0x1a   : > { %p587_p6 = pnand %p585_p5, %p573_p3  ;;  %p593_p12 = scmp.lt.s32.totalorder %s591_s12, %s584_s3 }
  0x1c   : > { %p588_p7 = pneg %p587_p6  ;;  %p594_p4 = por %p593_p12, %p592_p10 }
  0x1e   : > { %p595_p13 = pnand %p594_p4, %p588_p7 }
  0x20   : > { %598 = shalt.err (!%p595_p13)
}
  0x21   : > { %504 = dma.hbm_to_vmem [thread:$0]  (!%p770_p0), %s113_s27, 128, %s116_s29, %s104_s2  }
  0x22   : > { %p121_p11 = pnand %p478_p1, %p120_p2 }
  0x23   : > { %s785_s13 = sand.u32 (!%p121_p11), 1, %s663_s7  }
  0x24   : > { %124 = sbr.rel (%p121_p11) target bundleno = 169 (0xa9), region = 24  ;;  %s479_s15 = sshll.u32 (!%p121_p11), %s785_s13, 3 }
  0x25   : > { %s127_s16 = scalar_lea.sflag (!%p121_p11), [#allocation3], %s785_s13  ;;  %s791_s17 = scalar_lea.vmem (!%p121_p11), [#allocation2], %s479_s15 }
  0x29   : > { %650 = dma.done.wait (%p746_p8), %s127_s16, 128  }
  0x2a   : > { %652 = vsyncadd (%p746_p8), %s127_s16, 4294967168  ;;  %v150_v0 = vlaneseq  ;;  %v682_v21 = vmov 683565275   ;;  %v683_v23 = vmov 2475754826   ;;  %s148_s18 = scalar_lea.vmem [#allocation5], %s479_s15 }
  0x2b   : > { %v684_v25 = vmov 2131351028   ;;  %v685_v27 = vmov 2102212464   ;;  %v686_v29 = vmov 920167782  }
  0x2c   : > { %v797_v1 = vand.u32 127, %v150_v0  ;;  %v151_v6 = vshrl.u32 %v150_v0, 7  ;;  %v687_v36 = vmov 1326507024   ;;  %s392_s22 = sshll.u32 %s148_s18, 4  ;;  %s490_s23 = sshll.u32 %s671_s9, 7  ;;  %s826_s22 = int_to_ptr.vmem [resolvable:$true] %s392_s22 }
  0x2d   : > { %s390_s26 = scalar_lea.hbm %s872_s1, %s490_s23  ;;  %s378_s27 = scalar_lea.sflag [#allocation4], %s785_s13 }
  0x2e   : > { %v157_v2 = vshrl.u32 %v797_v1, 1  ;;  %v154_v7 = vcvt.s32.f32 %v151_v6  ;;  %s599_s28 = scalar_lea.vmem %s826_s22, 128  ;;  %s688_s9 = smov [#allocation5]  }
  0x2f   : > { %p600_p8 = scmp.ne.s32.totalorder %s826_s22, %s599_s28  ;;  %s603_s29 = sshll.u32 %s688_s9, 4  ;;  %s604_s29 = int_to_ptr.vmem [resolvable:$false] %s603_s29 }
  0x30   : > { %v158_v3 = vcvt.s32.f32 %v157_v2  ;;  %s605_s30 = scalar_lea.vmem %s604_s29, 256  ;;  %p606_p0 = scmp.lt.s32.totalorder %s826_s22, %s604_s29 }
  0x31   : > { %p601_p11 = pnand %p600_p8, %p750_p9  ;;  %p607_p1 = scmp.lt.s32.totalorder %s605_s30, %s599_s28 }
  0x32   : > { %v161_v4 = vmul.f32 -0.5756463, %v158_v3 }
  0x33   : > { %p602_p12 = pneg %p601_p11  ;;  %p608_p2 = por %p607_p1, %p606_p0 }
  0x34   : > { %v162_v5 = vmul.f32 1.442695, %v161_v4 }
  0x35   : > { %p609_p3 = pnand %p608_p2, %p602_p12 }
  0x36   : > { %565 = vpow2.f32 %v162_v5 }
  0x43   : > { %v566_v8 = vpop.eup %565 }
  0x44   : > { %v800_v9 = vmul.f32 %v566_v8, %v154_v7 }
  0x46   : > { %v168_v10 = vand.u32 2139095040, %v800_v9  ;;  %v165_v12 = vand.u32 2147483647, %v800_v9  ;;  %vm167_vm7 = vcmp.lt.s32.totalorder %v800_v9, 0  ;;  %vm257_vm15 = vweird.f32 %v800_v9 }
  0x48   : > { %v169_v11 = vshrl.u32 %v168_v10, 23  ;;  %v172_v15 = vand.u32 8388607, %v165_v12  ;;  %vm166_vm8 = vcmp.le.f32.partialorder %v165_v12, 0.7853982 }
  0x4a   : > { %v481_v13 = vadd.s32 4294967169, %v169_v11  ;;  %v173_v18 = vor.u32 8388608, %v172_v15 }
  0x4c   : > { %v175_v14 = vadd.s32 1, %v481_v13  ;;  %v213_v38 = vshll.u32 %v173_v18, 8 }
  0x4e   : > { %vm176_vm0 = vcmp.gt.s32.totalorder %v175_v14, 0 }
  0x4f   : > { %v177_v16 = vsel %vm176_vm0, %v175_v14, 0 }
  0x50   : > { %v179_v17 = vand.u32 31, %v177_v16  ;;  %v178_v19 = vshrl.u32 %v177_v16, 5 }
  0x52   : > { %v180_v20 = vsub.s32 32, %v179_v17  ;;  %v182_v22 = vshll.u32 %v682_v21, %v179_v17  ;;  %v185_v24 = vshll.u32 %v683_v23, %v179_v17  ;;  %v188_v26 = vshll.u32 %v684_v25, %v179_v17 }
  0x53   : > { %v191_v28 = vshll.u32 %v685_v27, %v179_v17  ;;  %v194_v30 = vshll.u32 %v686_v29, %v179_v17  ;;  %vm197_vm1 = vcmp.lt.s32.totalorder %v178_v19, 1  ;;  %vm200_vm2 = vcmp.lt.s32.totalorder %v178_v19, 4 }
  0x54   : > { %v181_v31 = vshrl.u32 %v682_v21, %v180_v20  ;;  %v183_v32 = vshrl.u32 %v683_v23, %v180_v20  ;;  %v186_v33 = vshrl.u32 %v684_v25, %v180_v20  ;;  %v189_v34 = vshrl.u32 %v685_v27, %v180_v20 }
  0x55   : > { %v192_v35 = vshrl.u32 %v686_v29, %v180_v20  ;;  %v195_v37 = vshrl.u32 %v687_v36, %v180_v20  ;;  %vm198_vm3 = vcmp.lt.s32.totalorder %v178_v19, 2  ;;  %vm199_vm4 = vcmp.lt.s32.totalorder %v178_v19, 3 }
  0x56   : > { %v184_v39 = vor.u32 %v183_v32, %v182_v22  ;;  %v187_v40 = vor.u32 %v186_v33, %v185_v24  ;;  %v190_v41 = vor.u32 %v189_v34, %v188_v26  ;;  %v159_v34 = vand.u32 1, %v797_v1 }
  0x57   : > { %v193_v42 = vor.u32 %v192_v35, %v191_v28  ;;  %v196_v43 = vor.u32 %v195_v37, %v194_v30 }
  0x58   : > { %v201_v44 = vsel %vm197_vm1, %v181_v31, %v184_v39  ;;  %v202_v45 = vsel %vm200_vm2, %v190_v41, 2102212464  ;;  %v205_v46 = vsel %vm197_vm1, %v184_v39, %v187_v40  ;;  %v209_v47 = vsel %vm197_vm1, %v187_v40, %v190_v41 }
  0x59   : > { %v203_v48 = vsel %vm199_vm4, %v187_v40, %v202_v45  ;;  %v206_v49 = vsel %vm200_vm2, %v193_v42, 920167782  ;;  %v210_v50 = vsel %vm200_vm2, %v196_v43, 1326507024  ;;  %vm160_vm0 = vcmp.eq.s32.totalorder %v159_v34, 0 }
  0x5a   : > { %v207_v51 = vsel %vm199_vm4, %v190_v41, %v206_v49  ;;  %v211_v52 = vsel %vm199_vm4, %v193_v42, %v210_v50  ;;  %v204_v53 = vsel %vm198_vm3, %v201_v44, %v203_v48  ;;  %v373_v42 = vld [vmem:[%s791_s17] sm:$0xff]  ;;  %vm375_vm1 = vcmask 261120  }
  0x5b   : > { %v208_v54 = vsel %vm198_vm3, %v205_v46, %v207_v51  ;;  %v212_v55 = vsel %vm198_vm3, %v209_v47, %v211_v52  ;;  %v220_v60 = vmul.u32 %v213_v38, %v204_v53 }
  0x5c   : > { %v806_v56 = vmul.u32.u64.low %v213_v38, %v212_v55  ;;  %v807_v57 = vmul.u32.u64.high %v213_v38, %v212_v55, %v806_v56  ;;  %v809_v58 = vmul.u32.u64.low %v213_v38, %v208_v54  ;;  %v810_v59 = vmul.u32.u64.high %v213_v38, %v208_v54, %v809_v58 }
  0x5e   : > { %vm222_vm5 = vc.u32 %v807_v57, %v809_v58  ;;  %v223_v61 = vadd.s32 1, %v810_v59  ;;  %v221_v10 = vadd.s32 %v809_v58, %v807_v57 }
  0x60   : > { %v224_v62 = vsel %vm222_vm5, %v223_v61, %v810_v59 }
  0x61   : > { %v225_v63 = vadd.s32 %v224_v62, %v220_v60 }
  0x63   : > { %v226_v0 = vadd.s32 536870912, %v225_v63 }
  0x65   : > { %v227_v2 = vshrl.u32 %v226_v0, 30 }
  0x67   : > { %v228_v3 = vshll.u32 %v227_v2, 30  ;;  %v251_v24 = vsub.s32 4, %v227_v2 }
  0x69   : > { %v229_v4 = vsub.s32 %v225_v63, %v228_v3  ;;  %v252_v27 = vsel %vm167_vm7, %v251_v24, %v227_v2 }
  0x6a   : > { %v254_v29 = vsel %vm166_vm8, 0, %v252_v27 }
  0x6b   : > { %v231_v5 = vsub.s32 0, %v229_v4  ;;  %v258_v30 = vadd.s32 3, %v254_v29  ;;  %v362_v32 = vand.u32 3, %v254_v29 }
  0x6d   : > { %v482_v6 = vmin.u32 %v231_v5, %v229_v4  ;;  %v259_v31 = vand.u32 3, %v258_v30  ;;  %vm367_vm10 = vcmp.eq.s32.totalorder %v362_v32, 2  ;;  %vm364_vm12 = vcmp.eq.s32.totalorder %v362_v32, 0 }
  0x6e   : > { %vm363_vm14 = vcmp.lt.s32.totalorder %v362_v32, 2 }
  0x6f   : > { %v233_v7 = vclz %v482_v6  ;;  %vm264_vm9 = vcmp.eq.s32.totalorder %v259_v31, 2  ;;  %vm261_vm11 = vcmp.eq.s32.totalorder %v259_v31, 0  ;;  %vm260_vm13 = vcmp.lt.s32.totalorder %v259_v31, 2 }
  0x71   : > { %v483_v8 = vadd.s32 4294967294, %v233_v7 }
  0x73   : > { %vm484_vm6 = vcmp.lt.s32.totalorder %v483_v8, 0 }
  0x74   : > { %v236_v11 = vsel %vm484_vm6, 0, %v483_v8 }
  0x75   : > { %v237_v13 = vsub.s32 32, %v236_v11  ;;  %v238_v14 = vshll.u32 %v229_v4, %v236_v11  ;;  %v241_v15 = vsub.s32 4294967266, %v236_v11 }
  0x77   : > { %v239_v16 = vshrl.u32 %v221_v10, %v237_v13  ;;  %v242_v17 = vadd.s32 127, %v241_v15 }
  0x79   : > { %v240_v18 = vor.u32 %v239_v16, %v238_v14  ;;  %v243_v19 = vshll.u32 %v242_v17, 23 }
  0x7b   : > { %v244_v20 = vor.u32 4788187, %v243_v19  ;;  %v247_v21 = vcvt.s32.f32 %v240_v18 }
  0x7d   : > { %v245_v22 = vand.u32 2147483647, %v244_v20 }
  0x7f   : > { %v248_v23 = vmul.f32 %v247_v21, %v245_v22 }
  0x81   : > { %v249_v25 = vxor.u32 2147483648, %v248_v23 }
  0x83   : > { %v250_v26 = vsel %vm167_vm7, %v249_v25, %v248_v23 }
  0x84   : > { %v253_v28 = vsel %vm166_vm8, %v800_v9, %v250_v26 }
  0x85   : > { %567 = vcosq.f32 %v253_v28 }
  0x86   : > { %569 = vsinq.f32 %v253_v28 }
  0x92   : > { %v568_v33 = vpop.eup %567 }
  0x93   : > { %v570_v35 = vpop.eup %569  ;;  %v265_v12 = vxor.u32 2147483648, %v568_v33 }
  0x94   : > { %v262_v36 = vxor.u32 2147483648, %v570_v35 }
  0x95   : > { %v266_v37 = vsel %vm264_vm9, %v265_v12, %v570_v35  ;;  %v369_v38 = vsel %vm367_vm10, %v265_v12, %v570_v35 }
  0x96   : > { %v263_v39 = vsel %vm261_vm11, %v568_v33, %v262_v36  ;;  %v366_v1 = vsel %vm364_vm12, %v568_v33, %v262_v36 }
  0x97   : > { %v267_v40 = vsel %vm260_vm13, %v263_v39, %v266_v37  ;;  %v370_v41 = vsel %vm363_vm14, %v366_v1, %v369_v38 }
  0x98   : > { %v268_v43 = vsel %vm257_vm15, nan, %v267_v40  ;;  %v371_v44 = vsel %vm257_vm15, nan, %v370_v41 }
  0x99   : > { %v372_v45 = vsel %vm160_vm0, %v268_v43, %v371_v44 }
  0x9a   : > { %v374_v9 = vadd.f32 %v373_v42, %v372_v45 }
  0x9c   : > { %376 = vst.msk [vmem:[%s148_s18] sm:$0xff] %vm375_vm1, %v374_v9 }
  0x9d   : > { %612 = shalt.err (!%p609_p3)
}
  0x9e   : > { %s613_s2 = scalar_lea.hbm %s390_s26, 128  ;;  %s617_s5 = scalar_lea.hbm %s872_s1, 256 }
  0x9f   : > { %p614_p5 = scmp.ne.s32.totalorder %s390_s26, %s613_s2  ;;  %p618_p10 = scmp.lt.s32.totalorder %s390_s26, %s872_s1 }
  0xa0   : > { %p619_p4 = scmp.lt.s32.totalorder %s617_s5, %s613_s2 }
  0xa1   : > { %p615_p6 = pnand %p614_p5, %p750_p9 }
  0xa2   : > { %p620_p13 = por %p619_p4, %p618_p10 }
  0xa3   : > { %p616_p7 = pneg %p615_p6 }
  0xa5   : > { %p621_p8 = pnand %p620_p13, %p616_p7 }
  0xa7   : > { %624 = shalt.err (!%p621_p8)
}
  0xa8   : > { %499 = dma.vmem_to_hbm [thread:$0]  (%p750_p9), %s826_s22, 128, %s390_s26, %s378_s27  }
  0xa9 PF: > { %s404_s15 = sand.u32 1, %s659_s6   ;;  %p878_p11 = scmp.ne.s32.totalorder %s876_s21, 0 }
  0xaa   : > { %p879_p12 = scmp.ge.s32.totalorder %s679_s11, 2  ;;  %s405_s16 = scalar_lea.sflag [#allocation4], %s404_s15 }
  0xac   : > { %p506_p0 = pnand %p879_p12, %p878_p11 }
  0xae   : > { %p507_p1 = pneg %p506_p0 }
  0xb0   : > { %654 = dma.done.wait (%p507_p1), %s405_s16, 128  }
  0xb1   : > { %656 = vsyncadd (%p507_p1), %s405_s16, 4294967168  ;;  %s17_s11 = sadd.s32 1, %s679_s11   ;;  %s880_s6 = smov %s663_s7 }
  0xb2   : > { %p14_p2 = scmp.ge.s32.totalorder %s17_s11, 4   ;;  %s881_s7 = smov %s667_s8 }
  0xb3   : > { %s882_s8 = smov %s755_s20  ;;  %s883_s9 = smov %s675_s10 }
  0xb4   : > { %s884_s10 = smov %s886_s14  ;;  %16 = sbr.rel (!%p14_p2) target bundleno = 6 (0x6), region = 69 }
  0xb9   :  { %410 = vsyncpa [#allocation3], 1 }
  0xba   :  { %412 = vsyncpa [#allocation3 + $0x1], 1 }
  0xbb   :  { %413 = vsyncpa [#allocation4], 1 }
  0xbc   :  { %415 = vsyncpa [#allocation4 + $0x1], 1 }

</bundles_post_ra>
